<compile_context>
chip_gen: v5e
topology: v5e:2x2
jax: 0.10.0
libtpu: 0.0.40
codegen_flags: <defaults>
</compile_context>

<pallas_src>
from functools import partial

import jax
import jax.numpy as jnp
from jax import lax
from jax.experimental import pallas as pl
from jax.experimental.pallas import tpu as pltpu


def _round_up(x, m):
    return (x + m - 1) // m * m


# ---------------------------------------------------------------------------
# Kernel 1: transpose-free batched path for dim != last (e.g. NCHW channels).
# Per grid step:  y[b, :, s0:s0+tS] = (W @ x[b, :, s0:s0+tS]) * scale + bias
# W (N, K) and the (N, 2) [scale|bias] slab are resident in VMEM (constant
# block index); no transpose of x is ever materialised in HBM.
# ---------------------------------------------------------------------------
def _batched_kernel(x_ref, w_ref, sb_ref, o_ref):
    w = w_ref[...]                                  # (N, K)
    x = x_ref[0].astype(w.dtype)                    # (K, tS)
    y = jnp.dot(w, x, preferred_element_type=jnp.float32)      # (N, tS)
    sb = sb_ref[...]                                # (N, 2): [:,0]=scale [:,1]=bias
    o_ref[0] = (y * sb[:, 0:1] + sb[:, 1:2]).astype(o_ref.dtype)


# ---------------------------------------------------------------------------
# Kernel 2: one-shot prep for the tiled 2-D path (large weights only).
# Fuses the weight-norm scale  g * rsqrt(sum_k v[k,n]^2)  and the f32 ->
# compute-dtype cast of the weight into a single pass over the weight.
# Grid: (N_pad//tn, K_pad//tk); nsq accumulates over the K axis.
# ---------------------------------------------------------------------------
def _prep_kernel(vT_ref, gb_ref, sb_ref, w_ref, nsq_ref):
    v = vT_ref[...]                                 # (tk, tn) f32
    w_ref[...] = v.astype(w_ref.dtype)              # fused cast: one narrow write

    @pl.when(pl.program_id(1) == 0)
    def _():
        nsq_ref[...] = jnp.zeros_like(nsq_ref)

    nsq_ref[...] += jnp.sum(v * v, axis=0, keepdims=True)      # (1, tn)

    @pl.when(pl.program_id(1) == pl.num_programs(1) - 1)
    def _():
        # rsqrt -> EUP slot.  An all-zero weight column gives inf/NaN exactly
        # like torch's weight_norm (zero-padded columns are sliced off later).
        sb_ref[0:1, :] = gb_ref[0:1, :] * lax.rsqrt(nsq_ref[...])
        sb_ref[1:2, :] = gb_ref[1:2, :]


# ---------------------------------------------------------------------------
# Kernel 3a/3b: tiled matmul  y = (x @ vT) * scale + bias.
#  3a (f32 output): accumulate straight into o_ref (block index constant over
#      k) -> no tm*tn scratch, no extra copy per tile.
#  3b (low-precision output): classic f32 VMEM accumulator.
# x is cast to the weight dtype inside the kernel (no wrapper cast pass).
# ---------------------------------------------------------------------------
def _mm_kernel_f32(x_ref, w_ref, sb_ref, o_ref):
    @pl.when(pl.program_id(2) == 0)
    def _():
        o_ref[...] = jnp.zeros_like(o_ref)

    w = w_ref[...]
    o_ref[...] += jnp.dot(x_ref[...].astype(w.dtype), w,
                          preferred_element_type=jnp.float32)

    @pl.when(pl.program_id(2) == pl.num_programs(2) - 1)
    def _():
        sb = sb_ref[...]                            # (2, tn)
        o_ref[...] = o_ref[...] * sb[0:1, :] + sb[1:2, :]


def _mm_kernel_lowp(x_ref, w_ref, sb_ref, o_ref, acc_ref):
    @pl.when(pl.program_id(2) == 0)
    def _():
        acc_ref[...] = jnp.zeros_like(acc_ref)

    w = w_ref[...]
    acc_ref[...] += jnp.dot(x_ref[...].astype(w.dtype), w,
                            preferred_element_type=jnp.float32)

    @pl.when(pl.program_id(2) == pl.num_programs(2) - 1)
    def _():
        sb = sb_ref[...]
        o_ref[...] = (acc_ref[...] * sb[0:1, :] + sb[1:2, :]).astype(o_ref.dtype)


# ---------------------------------------------------------------------------
# Tile-size heuristics.
# ---------------------------------------------------------------------------
def _pick_tm(M):
    # Minimise zero-padding of x (an exact-fit tile is allowed for modest M),
    # tie-break towards larger tiles (fewer grid steps, less weight streaming).
    cands = [1024, 512, 256, 128]
    if M <= 1024:
        cands.append(_round_up(max(M, 8), 8))
    return min(cands, key=lambda c: ((-M) % c, -c))


def _pick_ts(S):
    for cand in (2048, 1024, 512, 256, 128):
        if S % cand == 0:
            return cand
    return S  # block == full extent is always a legal tiling


def _batched_path_ok(K, N, S):
    if K * N * 4 > (4 << 20):           # weight must comfortably fit VMEM
        return False
    tS = _pick_ts(S)
    need = 2 * (K * tS * 4 + N * tS * 4) + 2 * (N * K * 4 + N * 2 * 4)
    return need <= (24 << 20)


# ---------------------------------------------------------------------------
# Wrappers.
# ---------------------------------------------------------------------------
def normed_linear_batched(x3, vT, g, b, *, out_dtype=None):
    """x3: (Bflat, K, S) feature-middle layout, vT: (K, N), g, b: (N,)."""
    Bflat, K, S = x3.shape
    K2, N = vT.shape
    assert K == K2
    out_dtype = jnp.dtype(out_dtype or x3.dtype)
    tS = _pick_ts(S)

    # Weight fits one tile -> plain jnp scale/bias (XLA fuses it); no prep call.
    vf = vT.astype(jnp.float32)
    scale = g.astype(jnp.float32) * lax.rsqrt(jnp.sum(vf * vf, axis=0))
    sb = jnp.stack([scale, b.astype(jnp.float32)], axis=1)          # (N, 2)
    w_nk = jnp.transpose(vT)                                        # (N, K), tiny

    est = 2 * (K * tS * x3.dtype.itemsize + N * tS * out_dtype.itemsize) \
        + 2 * (N * K * w_nk.dtype.itemsize + N * 2 * 4)
    vmem_limit = int(min(max(2 * est, 16 << 20), 64 << 20))

    return pl.pallas_call(
        _batched_kernel,
        out_shape=jax.ShapeDtypeStruct((Bflat, N, S), out_dtype),
        grid_spec=pltpu.PrefetchScalarGridSpec(
            num_scalar_prefetch=0,
            grid=(Bflat, S // tS),
            in_specs=[
                pl.BlockSpec((1, K, tS), lambda bi, si: (bi, 0, si)),
                pl.BlockSpec((N, K), lambda bi, si: (0, 0)),        # resident
                pl.BlockSpec((N, 2), lambda bi, si: (0, 0)),        # resident
            ],
            out_specs=pl.BlockSpec((1, N, tS), lambda bi, si: (bi, 0, si)),
        ),
        compiler_params=pltpu.CompilerParams(
            dimension_semantics=("parallel", "parallel"),
            vmem_limit_bytes=vmem_limit),
    )(x3, w_nk, sb)


def normed_linear_2d(x2d, vT, g, b, *, tm=None, tn=None, tk=None,
                     out_dtype=None, compute_dtype=jnp.bfloat16,
                     weight_resident=None):
    """x2d: (M, K), vT: (K, N) [= weight_v.T], g, b: (N,).  Returns (M, N)."""
    M, K = x2d.shape
    K2, N = vT.shape
    assert K == K2
    out_dtype = jnp.dtype(out_dtype or x2d.dtype)
    g32 = g.astype(jnp.float32)
    b32 = b.astype(jnp.float32)

    # N (lane) axis: pad to 128-multiples so output stores are lane-dense.
    if tn is None:
        tn = min(_round_up(N, 128), 512)
    N_pad = _round_up(N, tn)

    # Keep the whole weight resident in VMEM when it fits (one HBM read total).
    if weight_resident is None:
        weight_resident = K * N_pad * 4 <= (4 << 20)

    if weight_resident:
        tk, K_pad = K, K                  # no K tiling -> no K padding of x
    else:
        if tk is None:
            tk = 512                      # multiple of 128 (x lanes) and 16 (bf16 sublanes)
        K_pad = _round_up(K, tk)

    # M (row) axis: minimise padding, then guarantee >= 2 parallel grid blocks.
    tm_auto = tm is None
    if tm_auto:
        tm = _pick_tm(M)
    tm = min(tm, _round_up(M, 8))
    M_pad = _round_up(M, tm)
    if tm_auto and (M_pad // tm) * (N_pad // tn) < 2 and M > 8:
        tm = _round_up((M + 1) // 2, 8)   # split rows so both v7x TCs get work
        M_pad = 2 * tm

    x_p = x2d
    if M_pad != M or K_pad != K:
        x_p = jnp.pad(x2d, ((0, M_pad - M), (0, K_pad - K)))

    if weight_resident:
        # Small-weight fast path: no prep pallas_call (pure launch overhead at
        # this size); scale/bias are fused jnp ops, weight stays f32/resident.
        vf = vT.astype(jnp.float32)
        scale = g32 * lax.rsqrt(jnp.sum(vf * vf, axis=0))
        sb = jnp.stack([scale, b32], axis=0)                        # (2, N)
        if N_pad != N:
            sb = jnp.pad(sb, ((0, 0), (0, N_pad - N)))
            vf = jnp.pad(vf, ((0, 0), (0, N_pad - N)))
        w_c = vf
    else:
        # Large weights: fused prep -> scale/bias slab AND compute-dtype weight
        # in a single pass over v (one f32 read, one bf16 write).
        vT_p = vT.astype(jnp.float32)
        if K_pad != K or N_pad != N:
            vT_p = jnp.pad(vT_p, ((0, K_pad - K), (0, N_pad - N)))
        gb_p = jnp.stack([g32, b32], axis=0)
        if N_pad != N:
            gb_p = jnp.pad(gb_p, ((0, 0), (0, N_pad - N)))
        sb, w_c = pl.pallas_call(
            _prep_kernel,
            out_shape=(jax.ShapeDtypeStruct((2, N_pad), jnp.float32),
                       jax.ShapeDtypeStruct((K_pad, N_pad), compute_dtype)),
            grid_spec=pltpu.PrefetchScalarGridSpec(
                num_scalar_prefetch=0,
                grid=(N_pad // tn, K_pad // tk),
                in_specs=[
                    pl.BlockSpec((tk, tn), lambda j, k: (k, j)),
                    pl.BlockSpec((2, tn), lambda j, k: (0, j)),
                ],
                out_specs=[
                    pl.BlockSpec((2, tn), lambda j, k: (0, j)),
                    pl.BlockSpec((tk, tn), lambda j, k: (k, j)),
                ],
                scratch_shapes=[pltpu.VMEM((1, tn), jnp.float32)],
            ),
            compiler_params=pltpu.CompilerParams(
                dimension_semantics=("parallel", "arbitrary")),
        )(vT_p, gb_p)

    # ---- main tiled matmul ---------------------------------------------------
    wb = jnp.dtype(w_c.dtype).itemsize
    f32_out = out_dtype == jnp.dtype(jnp.float32)
    est = 2 * (tm * tk * x_p.dtype.itemsize + tk * tn * wb
               + 2 * tn * 4 + tm * tn * out_dtype.itemsize)
    if not f32_out:
        est += tm * tn * 4
    vmem_limit = int(min(max(2 * est, 16 << 20), 64 << 20))

    kernel = _mm_kernel_f32 if f32_out else _mm_kernel_lowp
    scratch = [] if f32_out else [pltpu.VMEM((tm, tn), jnp.float32)]

    out = pl.pallas_call(
        kernel,
        out_shape=jax.ShapeDtypeStruct((M_pad, N_pad), out_dtype),
        grid_spec=pltpu.PrefetchScalarGridSpec(
            num_scalar_prefetch=0,
            grid=(M_pad // tm, N_pad // tn, K_pad // tk),
            in_specs=[
                pl.BlockSpec((tm, tk), lambda i, j, k: (i, k)),
                pl.BlockSpec((tk, tn), lambda i, j, k: (k, j)),
                pl.BlockSpec((2, tn), lambda i, j, k: (0, j)),
            ],
            out_specs=pl.BlockSpec((tm, tn), lambda i, j, k: (i, j)),
            scratch_shapes=scratch,
        ),
        compiler_params=pltpu.CompilerParams(
            dimension_semantics=("parallel", "parallel", "arbitrary"),
            vmem_limit_bytes=vmem_limit),
    )(x_p, w_c, sb)

    if M_pad != M or N_pad != N:
        out = out[:M, :N]
    return out


# ---------------------------------------------------------------------------
# Forward: replicates NormedLinear.forward's shape bookkeeping.
# ---------------------------------------------------------------------------
def _forward_impl(x, vT, g, b, dim):
    K, N = vT.shape
    d = dim if dim >= 0 else x.ndim + dim
    shp = list(x.shape)
    if shp[d] != K:
        raise ValueError(f"feature dim {d} has size {shp[d]}, expected {K}")

    if d == x.ndim - 1:
        y = normed_linear_2d(x.reshape(-1, K), vT, g, b)
        return y.reshape(shp[:-1] + [N])

    bflat = 1
    for s in shp[:d]:
        bflat *= s
    S = 1
    for s in shp[d + 1:]:
        S *= s

    if _batched_path_ok(K, N, S):
        # Transpose-free: only a (free) reshape of x, one HBM pass over x.
        y3 = normed_linear_batched(x.reshape(bflat, K, S), vT, g, b)
        return y3.reshape(shp[:d] + [N] + shp[d + 1:])

    # Fallback for huge K/N: torch-style flatten + transpose, tiled 2-D kernel.
    x2 = jnp.swapaxes(x.reshape(shp[:d + 1] + [S]), -1, -2)       # (..., S, K)
    y = normed_linear_2d(x2.reshape(-1, K), vT, g, b)
    y = jnp.swapaxes(y.reshape(x2.shape[:-1] + (N,)), -1, -2)
    return y.reshape(shp[:d] + [N] + shp[d + 1:])


@partial(jax.jit, static_argnames=("dim",))
def normed_linear_forward(x, vT, g, b, dim=-1):
    return _forward_impl(x, vT, g, b, dim)


@partial(jax.jit, static_argnames=("dim",))
def data_dependent_init(x, vT, dim=-1, init_scale=0.01, eps=1e-8):
    """NormedLinear.init_parameters: run the linear with g=1, b=0, then set
    g, b so each output feature has mean 0 / std init_scale over the batch.
    Runs once, in f32, through the same Pallas kernels as the forward pass."""
    K, N = vT.shape
    g0 = jnp.ones((N,), jnp.float32)
    b0 = jnp.zeros((N,), jnp.float32)
    y = _forward_impl(x, vT, g0, b0, dim)
    d = dim if dim >= 0 else x.ndim + dim
    y2 = jnp.moveaxis(y, d, -1).reshape(-1, N).astype(jnp.float32)
    m_init = jnp.mean(y2, axis=0)
    v_init = jnp.var(y2, axis=0, ddof=1)            # torch.var is unbiased
    scale_init = init_scale / jnp.sqrt(v_init + eps)
    return g0 * scale_init, b0 - m_init * scale_init


# ---------------------------------------------------------------------------
# Pure-JAX f32 reference (torch weight_norm(dim=0) + Linear) for checking.
# ---------------------------------------------------------------------------
def _reference_forward(x, v, g, b, dim):
    row_norm = jnp.sqrt(jnp.sum(v * v, axis=1, keepdims=True))    # (N, 1)
    Wm = v * (g[:, None] / row_norm)
    d = dim if dim >= 0 else x.ndim + dim
    xm = jnp.moveaxis(x, d, -1)
    y = jnp.einsum("...k,nk->...n", xm, Wm) + b
    return jnp.moveaxis(y, -1, d)


if __name__ == "__main__":
    key = jax.random.PRNGKey(0)
    k_x, k_v, k_x2, k_g2, k_b2, k_3 = jax.random.split(key, 6)

    # 1) NCHW input, linear along channels (dim=1) with first-call init:
    #    transpose-free batched Pallas kernel, f32 end to end.
    in_features, out_features = 32, 16
    B, C, H, W = 4, in_features, 16, 16
    dim = 1

    x = jax.random.normal(k_x, (B, C, H, W), dtype=jnp.float32)
    # nn.Linear weight is (out_features, in_features); init draws v ~ N(0,0.05).
    v = 0.05 * jax.random.normal(k_v, (out_features, in_features), jnp.float32)
    vT = jnp.asarray(v.T)     # stored transposed once at parameter-creation time

    g, bias = jax.block_until_ready(data_dependent_init(x, vT, dim=dim))
    y = jax.block_until_ready(normed_linear_forward(x, vT, g, bias, dim=dim))
    assert y.shape == (B, out_features, H, W), y.shape

    y_ref = _reference_forward(x, v, g, bias, dim)
    assert jnp.allclose(y, y_ref, atol=1e-4, rtol=1e-3), \
        float(jnp.max(jnp.abs(y - y_ref)))
    # init_parameters semantics: per-feature mean ~ 0, std ~ 0.01 over the batch
    y_flat = jnp.moveaxis(y, dim, -1).reshape(-1, out_features)
    assert float(jnp.max(jnp.abs(jnp.mean(y_flat, axis=0)))) < 1e-3
    assert float(jnp.max(jnp.abs(jnp.std(y_flat, axis=0, ddof=1) - 0.01))) < 2e-3

    # 2) Features-last input (dim=-1): resident-weight 2-D kernel, f32 output.
    x2 = jax.random.normal(k_x2, (8, 64, in_features), jnp.float32)
    g2 = 1.0 + 0.1 * jax.random.normal(k_g2, (out_features,), jnp.float32)
    b2 = 0.1 * jax.random.normal(k_b2, (out_features,), jnp.float32)
    y2 = jax.block_until_ready(normed_linear_forward(x2, vT, g2, b2, dim=-1))
    assert y2.shape == (8, 64, out_features)
    y2_ref = _reference_forward(x2, v, g2, b2, -1)
    assert jnp.allclose(y2, y2_ref, atol=1e-4, rtol=1e-3), \
        float(jnp.max(jnp.abs(y2 - y2_ref)))

    # 3) Larger weight, non-resident tiled path: fused prep kernel (scale +
    #    bf16 cast in one weight pass), bf16 MXU, f32 scratch, bf16 output.
    k_x3, k_v3, k_g3, k_b3 = jax.random.split(k_3, 4)
    M3, K3, N3 = 256, 256, 256
    x3 = jax.random.normal(k_x3, (M3, K3), jnp.float32)
    v3 = 0.05 * jax.random.normal(k_v3, (N3, K3), jnp.float32)
    g3 = 1.0 + 0.1 * jax.random.normal(k_g3, (N3,), jnp.float32)
    b3 = 0.1 * jax.random.normal(k_b3, (N3,), jnp.float32)
    y3 = jax.block_until_ready(
        normed_linear_2d(x3, jnp.asarray(v3.T), g3, b3,
                         tm=128, tn=128, tk=128,
                         weight_resident=False,
                         compute_dtype=jnp.bfloat16,
                         out_dtype=jnp.bfloat16))
    y3_ref = _reference_forward(x3, v3, g3, b3, -1)
    assert jnp.allclose(y3.astype(jnp.float32), y3_ref, atol=5e-2, rtol=5e-2), \
        float(jnp.max(jnp.abs(y3.astype(jnp.float32) - y3_ref)))

    print("KERNEL_OK")
</pallas_src>

<mosaic_0001>
module attributes {stable_mosaic.version = 11 : i64} {
  func.func @_batched_kernel(%arg0: i32, %arg1: i32, %arg2: memref<1x32x256xf32, #tpu.memory_space<vmem>>, %arg3: memref<16x32xf32, #tpu.memory_space<vmem>>, %arg4: memref<16x2xf32, #tpu.memory_space<vmem>>, %arg5: memref<1x16x256xf32, #tpu.memory_space<vmem>>) attributes {dimension_semantics = [#tpu.dimension_semantics<parallel>, #tpu.dimension_semantics<parallel>], iteration_bounds = array<i64: 4, 1>, scalar_prefetch = 0 : i64, scratch_operands = 0 : i64, tpu.core_type = #tpu.core_type<tc>, window_params = [{transform_indices = @transform_0, window_bounds = array<i64: 1, 32, 256>}, {pipeline_mode = #tpu.pipeline_mode<synchronous>, transform_indices = @transform_1, window_bounds = array<i64: 16, 32>}, {pipeline_mode = #tpu.pipeline_mode<synchronous>, transform_indices = @transform_2, window_bounds = array<i64: 16, 2>}, {transform_indices = @transform_3, window_bounds = array<i64: 1, 16, 256>}]} {
    %c0 = arith.constant 0 : index
    %c0_0 = arith.constant 0 : index
    %0 = vector.load %arg3[%c0, %c0_0] : memref<16x32xf32, #tpu.memory_space<vmem>>, vector<16x32xf32>
    %c0_1 = arith.constant 0 : index
    %c0_2 = arith.constant 0 : index
    %c0_3 = arith.constant 0 : index
    %1 = vector.load %arg2[%c0_1, %c0_2, %c0_3] : memref<1x32x256xf32, #tpu.memory_space<vmem>>, vector<1x32x256xf32>
    %2 = vector.shape_cast %1 : vector<1x32x256xf32> to vector<32x256xf32>
    %cst = arith.constant dense<0.000000e+00> : vector<16x256xf32>
    %3 = tpu.matmul %0, %2, %cst {dimension_numbers = #tpu.dot_dimension_numbers<[1], [0], [0], [1], [0, 0, 1, 1], [], []>} : vector<16x32xf32>, vector<32x256xf32>, vector<16x256xf32> -> vector<16x256xf32>
    %c0_4 = arith.constant 0 : index
    %c0_5 = arith.constant 0 : index
    %4 = vector.load %arg4[%c0_4, %c0_5] : memref<16x2xf32, #tpu.memory_space<vmem>>, vector<16x2xf32>
    %5 = vector.extract_strided_slice %4 {offsets = [0, 0], sizes = [16, 1], strides = [1, 1]} : vector<16x2xf32> to vector<16x1xf32>
    %6 = vector.broadcast %5 : vector<16x1xf32> to vector<16x256xf32>
    %7 = arith.mulf %3, %6 : vector<16x256xf32>
    %8 = vector.extract_strided_slice %4 {offsets = [0, 1], sizes = [16, 1], strides = [1, 1]} : vector<16x2xf32> to vector<16x1xf32>
    %9 = vector.broadcast %8 : vector<16x1xf32> to vector<16x256xf32>
    %10 = arith.addf %7, %9 : vector<16x256xf32>
    %c0_6 = arith.constant 0 : index
    %c0_7 = arith.constant 0 : index
    %c0_8 = arith.constant 0 : index
    %11 = vector.load %arg5[%c0_6, %c0_7, %c0_8] : memref<1x16x256xf32, #tpu.memory_space<vmem>>, vector<1x16x256xf32>
    %12 = vector.shape_cast %11 : vector<1x16x256xf32> to vector<16x256xf32>
    %13 = vector.shape_cast %10 : vector<16x256xf32> to vector<1x16x256xf32>
    tpu.vector_store %arg5[%c0_6, %c0_7, %c0_8], %13 {strides = array<i32>} : memref<1x16x256xf32, #tpu.memory_space<vmem>>, vector<1x16x256xf32>,
    return
  }
  func.func @transform_0(%arg0: i32, %arg1: i32) -> (i32, i32, i32) {
    %c0_i32 = arith.constant 0 : i32
    %c0_i32_0 = arith.constant 0 : i32
    return %arg0, %c0_i32, %arg1 : i32, i32, i32
  }
  func.func @transform_1(%arg0: i32, %arg1: i32) -> (i32, i32) {
    %c0_i32 = arith.constant 0 : i32
    %c0_i32_0 = arith.constant 0 : i32
    %c0_i32_1 = arith.constant 0 : i32
    return %c0_i32, %c0_i32_0 : i32, i32
  }
  func.func @transform_2(%arg0: i32, %arg1: i32) -> (i32, i32) {
    %c0_i32 = arith.constant 0 : i32
    %c0_i32_0 = arith.constant 0 : i32
    %c0_i32_1 = arith.constant 0 : i32
    return %c0_i32, %c0_i32_0 : i32, i32
  }
  func.func @transform_3(%arg0: i32, %arg1: i32) -> (i32, i32, i32) {
    %c0_i32 = arith.constant 0 : i32
    %c0_i32_0 = arith.constant 0 : i32
    return %arg0, %c0_i32, %arg1 : i32, i32, i32
  }
}

</mosaic_0001>

<bundles_post_ra>
// kernel: data_dependent_init.1
= control target key start
LH: loop header
LB: loop body
LE: loop exit
PB: predicated region body
PF: predicated region fallthrough
CT: control target
= control target key end

     0   :  { %s492_s12 = smov 0   ;;  %s494_s13 = smov 0   ;;  %s541_s0 = inlined_call_operand.vmem [shape: f32[4,32,256], index: 0, kind: input, shape index: {}]   ;;  %s542_s1 = inlined_call_operand.vmem [shape: f32[16,32], index: 1, kind: input, shape index: {}]   ;;  %s543_s2 = inlined_call_operand.vmem [shape: f32[16,2], index: 2, kind: input, shape index: {}]   ;;  %s544_s3 = inlined_call_operand.vmem [shape: f32[4,16,256], index: 3, kind: output, shape index: {}]  }
   0x1   :  { %s496_s14 = smov 0  }
   0x2 LB: > { %s25_s15 = sadd.s32 1, %s464_s13  ;;  %p396_p0 = scmp.ge.s32.totalorder %s468_s14, 1  ;;  %s468_s14 = sphi %s496_s14, %s13_s14   ;;  %s464_s13 = sphi %s494_s13, %s546_s13   ;;  %s460_s12 = sphi %s492_s12, %s545_s12  }
   0x3   : > { %p27_p1 = scmp.ge.s32.totalorder %s25_s15, 4  ;;  %p158_p2 = scmp.lt.s32.totalorder %s468_s14, 5 }
   0x5   : > { %s548_s15 = smov (%p27_p1, %s25_s15), 0  ;;  %p159_p3 = pnand %p396_p0, %p158_p2 }
   0x6   : > { %p191_p4 = scmp.lt.s32.totalorder (!%p159_p3), %s460_s12, 3 }
   0x7   : > { %162 = sbr.rel (%p159_p3) target bundleno = 162 (0xa2), region = 32 }
   0xc   : > { %v273_v0 = vld [vmem:[%s543_s2] sm:$0xff]  ;;  %v470_v1 = vmov 0   ;;  %s550_s12 = smov (!%p191_p4, %s460_s12), 3  ;;  %v471_v2 = vmov 1   ;;  %vm220_vm0 = vcmask 261120   ;;  %v211_v12 = vld [vmem:[%s542_s1 + $0x8] sm:$0xff] }
   0xd   : > { %443 = vset.pattern.permute.xlu0 %v470_v1  ;;  %444 = vset.pattern.permute.xlu1 %v471_v2  ;;  %s407_s18 = sshll.u32 %s550_s12, 6  ;;  %v210_v11 = vld [vmem:[%s542_s1] sm:$0xff]  ;;  %v274_v13 = vld [vmem:[%s543_s2 + $0x8] sm:$0xff]  ;;  %s408_s28 = sshll.u32 %s550_s12, 5 }
   0xe   : > { %277 = vperm.xlu0 %443, %v273_v0   ;;  %290 = vperm.xlu1 %444, %v273_v0   ;;  %s198_s21 = scalar_lea.vmem %s541_s0, %s407_s18  ;;  %s208_s4 = scalar_lea.vmem %s544_s3, %s408_s28 }
   0xf   : > { %v218_v3 = vld [vmem:[%s198_s21 + $0x30] sm:$0xff]  ;;  %v219_v4 = vld [vmem:[%s198_s21 + $0x38] sm:$0xff]  ;;  %v216_v5 = vld [vmem:[%s198_s21 + $0x20] sm:$0xff] }
  0x10   : > { %239 = vmatpush.msra.mxu0 %v218_v3  ;;  %409 = vmatpush.msra.mxu2 %v218_v3  ;;  %v217_v6 = vld [vmem:[%s198_s21 + $0x28] sm:$0xff]  ;;  %v214_v7 = vld [vmem:[%s198_s21 + $0x10] sm:$0xff]  ;;  %v215_v8 = vld [vmem:[%s198_s21 + $0x18] sm:$0xff] }
  0x11   : > { %262 = vmatpush.msra.mxu1 %v219_v4  ;;  %413 = vmatpush.msra.mxu3 %v219_v4  ;;  %v212_v9 = vld [vmem:[%s198_s21] sm:$0xff]  ;;  %v213_v10 = vld [vmem:[%s198_s21 + $0x8] sm:$0xff] }
  0x12   : > { %240 = vmatpush.msra.mxu0 %v216_v5  ;;  %410 = vmatpush.msra.mxu2 %v216_v5 }
  0x13   : > { %263 = vmatpush.msra.mxu1 %v217_v6  ;;  %414 = vmatpush.msra.mxu3 %v217_v6 }
  0x14   : > { %241 = vmatpush.msra.mxu0 %v214_v7  ;;  %411 = vmatpush.msra.mxu2 %v214_v7 }
  0x15   : > { %264 = vmatpush.msra.mxu1 %v215_v8  ;;  %415 = vmatpush.msra.mxu3 %v215_v8 }
  0x16   : > { %242 = vmatpush.msra.mxu0 %v212_v9  ;;  %412 = vmatpush.msra.mxu2 %v212_v9 }
  0x17   : > { %265 = vmatpush.msra.mxu1 %v213_v10  ;;  %416 = vmatpush.msra.mxu3 %v213_v10 }
  0x18   : > { %401 = vmatmul.msk.f32.vlgmr.msra.gmra.mxu0 %vm220_vm0, %v210_v11  ;;  %402 = vmatmul.msk.f32.vlgmr.msra.gmra.mxu2 %vm220_vm0, %v211_v12 }
  0x19   : > { %403 = vmatmul.msk.f32.vlgmr.msra.gmra.mxu1 %vm220_vm0, %v210_v11  ;;  %404 = vmatmul.msk.f32.vlgmr.msra.gmra.mxu3 %vm220_vm0, %v211_v12 }
  0x1a   : > { %282 = vperm.xlu0 %443, %v274_v13   ;;  %294 = vperm.xlu1 %444, %v274_v13  }
  0x22   : > { %445 = vset.pattern.permute.xlu0 %v471_v2 }
  0x80   : > { %v278_v14 = vpop.permute.xlu0 %277  ;;  %v291_v15 = vpop.permute.xlu1 %290 }
  0x8c   : > { %v283_v22 = vpop.permute.xlu0 %282  ;;  %v295_v26 = vpop.permute.xlu1 %294 }
  0x95   : > { %v244_v16 = vpop.f32.mrf.mxu0 }
  0x96   : > { %v285_v17 = vmul.f32 %v278_v14, %v244_v16  ;;  %v267_v18 = vpop.f32.mrf.mxu1 }
  0x97   : > { %v286_v19 = vmul.f32 %v278_v14, %v267_v18 }
  0x98   : > { %v297_v20 = vadd.f32 %v291_v15, %v285_v17 }
  0x99   : > { %v298_v21 = vadd.f32 %v291_v15, %v286_v19 }
  0x9a   : > { %301 = vst [vmem:[%s208_s4] sm:$0xff] %v297_v20 }
  0x9b   : > { %302 = vst [vmem:[%s208_s4 + $0x8] sm:$0xff] %v298_v21  ;;  %v247_v23 = vpop.f32.mrf.mxu2 }
  0x9c   : > { %v287_v24 = vmul.f32 %v283_v22, %v247_v23  ;;  %v270_v25 = vpop.f32.mrf.mxu3 }
  0x9d   : > { %v288_v27 = vmul.f32 %v283_v22, %v270_v25 }
  0x9e   : > { %v299_v28 = vadd.f32 %v295_v26, %v287_v24 }
  0x9f   : > { %v300_v29 = vadd.f32 %v295_v26, %v288_v27 }
  0xa0   : > { %303 = vst [vmem:[%s208_s4 + $0x10] sm:$0xff] %v299_v28 }
  0xa1   : > { %304 = vst [vmem:[%s208_s4 + $0x18] sm:$0xff] %v300_v29 }
  0xa2 PF: > { %s13_s14 = sadd.s32 1, %s468_s14   ;;  %s545_s12 = smov %s464_s13 }
  0xa3   : > { %p10_p5 = scmp.ge.s32.totalorder %s13_s14, 6   ;;  %s546_s13 = smov %s548_s15 }
  0xa5   :  { %12 = sbr.rel (!%p10_p5) target bundleno = 2 (0x2), region = 62 }

</bundles_post_ra>
